<compile_context>
chip_gen: v5e
topology: v5e:2x2
jax: 0.10.0
libtpu: 0.0.40
codegen_flags: <defaults>
</compile_context>

<pallas_src>
import functools

import jax
import jax.numpy as jnp
from jax.experimental import pallas as pl
from jax.experimental.pallas import tpu as pltpu


def _round_up(x, m):
    return ((x + m - 1) // m) * m


# ----------------------------------------------------------------------------
# Kernel: fused MLP forward (split first matmul + bias + ReLU on hidden layers)
# ----------------------------------------------------------------------------
def _mlp_kernel(n_layers, z_ref, m_ref, *refs):
    """refs = (w0_z, w0_m, b0, w1, b1, ..., w_{L-1}, b_{L-1}, out_ref).

    Weights arrive already in the matmul dtype (f32 or bf16); biases arrive in f32.
    Accumulation is always f32 (preferred_element_type).
    """
    out_ref = refs[-1]
    params = refs[:-1]

    # Layer 0: fused concat -> two matmuls sharing the f32 accumulator.
    w0_z = params[0][...]
    w0_m = params[1][...]
    b0 = params[2][...]
    h = (jnp.dot(z_ref[...], w0_z, preferred_element_type=jnp.float32)
         + jnp.dot(m_ref[...], w0_m, preferred_element_type=jnp.float32)
         + b0)
    if n_layers > 1:                      # hidden layers get the activation (ReLU)
        h = jnp.maximum(h, 0.0)

    idx = 3
    for i in range(1, n_layers):
        w = params[idx][...]
        b = params[idx + 1][...]
        idx += 2
        # Cast activations to the matmul operand dtype (no-op in the f32 path),
        # accumulate in f32, keep bias/ReLU on the f32 VPU path.
        h = jnp.dot(h.astype(w.dtype), w, preferred_element_type=jnp.float32) + b
        if i < n_layers - 1:
            h = jnp.maximum(h, 0.0)

    out_ref[...] = h.astype(out_ref.dtype)


# ----------------------------------------------------------------------------
# Wrapper: builds the pallas_call for a given layer stack
# ----------------------------------------------------------------------------
def decoder_forward(z, momenta, weights, biases, *,
                    matmul_dtype=jnp.float32, max_batch_tile=256):
    """z: (B, latent_dim), momenta: (B, momenta_dim).  Returns (B, output_dim) f32."""
    B, latent_dim = z.shape
    momenta_dim = momenta.shape[1]
    n_layers = len(weights)
    out_dim = weights[-1].shape[1]

    # --- pad final layer so the output is lane-dense (multiple of 128) ----------------
    out_dim_p = _round_up(max(out_dim, 128), 128)
    w_last, b_last = weights[-1], biases[-1]
    if out_dim_p != out_dim:
        w_last = jnp.pad(w_last, ((0, 0), (0, out_dim_p - out_dim)))
        b_last = jnp.pad(b_last, ((0, 0), (0, out_dim_p - out_dim)))
    weights = list(weights[:-1]) + [w_last]
    biases = list(biases[:-1]) + [b_last]

    # --- batch tiling: single grid step when B is small, 256-row tiles otherwise ------
    if B <= max_batch_tile:
        batch_tile = _round_up(B, 8)            # sublane-aligned, one grid step
    else:
        batch_tile = max_batch_tile             # multiple of 8 (and of 128/256)
    B_pad = _round_up(B, batch_tile)
    if B_pad != B:
        z = jnp.pad(z, ((0, B_pad - B), (0, 0)))
        momenta = jnp.pad(momenta, ((0, B_pad - B), (0, 0)))

    # --- hoist all casts out of the kernel: params stored in the matmul dtype ---------
    mm = jnp.dtype(matmul_dtype)
    w0 = weights[0].astype(mm)
    params = [w0[:latent_dim], w0[latent_dim:], biases[0].astype(jnp.float32)]
    for w, b in zip(weights[1:], biases[1:]):
        params.append(w.astype(mm))
        params.append(b.astype(jnp.float32))
    z_in = z.astype(mm)
    m_in = momenta.astype(mm)

    # --- specs -------------------------------------------------------------------------
    in_specs = [
        pl.BlockSpec((batch_tile, latent_dim), lambda i: (i, 0)),
        pl.BlockSpec((batch_tile, momenta_dim), lambda i: (i, 0)),
    ]
    for p in params:
        in_specs.append(pl.BlockSpec(p.shape, lambda i: (0, 0)))   # fully VMEM-resident
    out_spec = pl.BlockSpec((batch_tile, out_dim_p), lambda i: (i, 0))

    # --- cost estimate & VMEM budget -----------------------------------------------------
    dims = [latent_dim + momenta_dim] + [w.shape[1] for w in weights]
    flops = 2 * B_pad * sum(a * b for a, b in zip(dims[:-1], dims[1:]))
    param_bytes = sum(int(p.size) * p.dtype.itemsize for p in params)
    io_bytes = (B_pad * (latent_dim + momenta_dim) * mm.itemsize
                + B_pad * out_dim_p * 4)
    cost = pl.CostEstimate(flops=int(flops), transcendentals=0,
                           bytes_accessed=int(param_bytes + io_bytes))

    tile_io_bytes = (batch_tile * (latent_dim + momenta_dim) * mm.itemsize
                     + batch_tile * out_dim_p * 4)
    # params (double-buffered by the pipeline) + double-buffered I/O tiles + headroom
    vmem_limit = int(min(100 << 20,
                         max(2 * param_bytes + 2 * tile_io_bytes + (8 << 20), 16 << 20)))

    kernel = functools.partial(_mlp_kernel, n_layers)
    out = pl.pallas_call(
        kernel,
        out_shape=jax.ShapeDtypeStruct((B_pad, out_dim_p), jnp.float32),
        grid_spec=pltpu.PrefetchScalarGridSpec(
            num_scalar_prefetch=0,
            grid=(B_pad // batch_tile,),
            in_specs=in_specs,
            out_specs=out_spec,
        ),
        compiler_params=pltpu.CompilerParams(
            dimension_semantics=("parallel",),
            vmem_limit_bytes=vmem_limit,
        ),
        cost_estimate=cost,
    )(z_in, m_in, *params)

    return out[:B, :out_dim]


# ----------------------------------------------------------------------------
# Deterministic parameter init (PyTorch nn.Linear-style uniform(-1/sqrt(fan_in), ...))
# ----------------------------------------------------------------------------
def init_params(key, layer_dims):
    weights, biases = [], []
    for fan_in, fan_out in zip(layer_dims[:-1], layer_dims[1:]):
        key, kw, kb = jax.random.split(key, 3)
        bound = 1.0 / jnp.sqrt(fan_in)
        w = jax.random.uniform(kw, (fan_in, fan_out), jnp.float32, -bound, bound)
        b = jax.random.uniform(kb, (1, fan_out), jnp.float32, -bound, bound)
        weights.append(w)
        biases.append(b)
    return weights, biases


# Pure-JAX reference for correctness checking.
def decoder_ref(z, momenta, weights, biases):
    h = jnp.concatenate([z, momenta], axis=1)
    n = len(weights)
    for i, (w, b) in enumerate(zip(weights, biases)):
        h = h @ w + b
        if i < n - 1:
            h = jnp.maximum(h, 0.0)
    return h


if __name__ == "__main__":
    # Small, module-consistent shapes.
    batch = 16
    latent_dim = 16
    momenta_dim = 16
    hidden_layers = [64, 64]
    output_dim = 32

    key = jax.random.PRNGKey(0)
    kz, km, kp = jax.random.split(key, 3)
    z = jax.random.normal(kz, (batch, latent_dim), jnp.float32)
    momenta = jax.random.normal(km, (batch, momenta_dim), jnp.float32)

    layer_dims = [latent_dim + momenta_dim] + hidden_layers + [output_dim]
    weights, biases = init_params(kp, layer_dims)

    ref = decoder_ref(z, momenta, weights, biases)

    # f32 matmul path: bit-for-bit-ish against the reference.
    out_f32 = jax.block_until_ready(
        decoder_forward(z, momenta, weights, biases, matmul_dtype=jnp.float32))
    assert out_f32.shape == (batch, output_dim)
    assert jnp.allclose(out_f32, ref, atol=1e-5, rtol=1e-5)

    # bf16-operand / f32-accumulate path (MXU full rate on v6e/v7x): looser tolerance.
    out_bf16 = jax.block_until_ready(
        decoder_forward(z, momenta, weights, biases, matmul_dtype=jnp.bfloat16))
    assert out_bf16.shape == (batch, output_dim)
    assert jnp.allclose(out_bf16, ref, atol=5e-2, rtol=5e-2)

    print("KERNEL_OK")
</pallas_src>

<mosaic_0001>
module attributes {stable_mosaic.version = 11 : i64} {
  func.func @_mlp_kernel(%arg0: i32, %arg1: memref<16x16xf32, #tpu.memory_space<vmem>>, %arg2: memref<16x16xf32, #tpu.memory_space<vmem>>, %arg3: memref<16x64xf32, #tpu.memory_space<vmem>>, %arg4: memref<16x64xf32, #tpu.memory_space<vmem>>, %arg5: memref<1x64xf32, #tpu.memory_space<vmem>>, %arg6: memref<64x64xf32, #tpu.memory_space<vmem>>, %arg7: memref<1x64xf32, #tpu.memory_space<vmem>>, %arg8: memref<64x128xf32, #tpu.memory_space<vmem>>, %arg9: memref<1x128xf32, #tpu.memory_space<vmem>>, %arg10: memref<16x128xf32, #tpu.memory_space<vmem>>) attributes {dimension_semantics = [#tpu.dimension_semantics<parallel>], iteration_bounds = array<i64: 1>, scalar_prefetch = 0 : i64, scratch_operands = 0 : i64, tpu.core_type = #tpu.core_type<tc>, window_params = [{transform_indices = @transform_0, window_bounds = array<i64: 16, 16>}, {transform_indices = @transform_1, window_bounds = array<i64: 16, 16>}, {pipeline_mode = #tpu.pipeline_mode<synchronous>, transform_indices = @transform_2, window_bounds = array<i64: 16, 64>}, {pipeline_mode = #tpu.pipeline_mode<synchronous>, transform_indices = @transform_3, window_bounds = array<i64: 16, 64>}, {pipeline_mode = #tpu.pipeline_mode<synchronous>, transform_indices = @transform_4, window_bounds = array<i64: 1, 64>}, {pipeline_mode = #tpu.pipeline_mode<synchronous>, transform_indices = @transform_5, window_bounds = array<i64: 64, 64>}, {pipeline_mode = #tpu.pipeline_mode<synchronous>, transform_indices = @transform_6, window_bounds = array<i64: 1, 64>}, {pipeline_mode = #tpu.pipeline_mode<synchronous>, transform_indices = @transform_7, window_bounds = array<i64: 64, 128>}, {pipeline_mode = #tpu.pipeline_mode<synchronous>, transform_indices = @transform_8, window_bounds = array<i64: 1, 128>}, {transform_indices = @transform_9, window_bounds = array<i64: 16, 128>}]} {
    %c0 = arith.constant 0 : index
    %c0_0 = arith.constant 0 : index
    %0 = vector.load %arg3[%c0, %c0_0] : memref<16x64xf32, #tpu.memory_space<vmem>>, vector<16x64xf32>
    %c0_1 = arith.constant 0 : index
    %c0_2 = arith.constant 0 : index
    %1 = vector.load %arg4[%c0_1, %c0_2] : memref<16x64xf32, #tpu.memory_space<vmem>>, vector<16x64xf32>
    %c0_3 = arith.constant 0 : index
    %c0_4 = arith.constant 0 : index
    %2 = vector.load %arg5[%c0_3, %c0_4] : memref<1x64xf32, #tpu.memory_space<vmem>>, vector<1x64xf32>
    %c0_5 = arith.constant 0 : index
    %c0_6 = arith.constant 0 : index
    %3 = vector.load %arg1[%c0_5, %c0_6] : memref<16x16xf32, #tpu.memory_space<vmem>>, vector<16x16xf32>
    %cst = arith.constant dense<0.000000e+00> : vector<16x64xf32>
    %4 = tpu.matmul %3, %0, %cst {dimension_numbers = #tpu.dot_dimension_numbers<[1], [0], [0], [1], [0, 0, 1, 1], [], []>} : vector<16x16xf32>, vector<16x64xf32>, vector<16x64xf32> -> vector<16x64xf32>
    %c0_7 = arith.constant 0 : index
    %c0_8 = arith.constant 0 : index
    %5 = vector.load %arg2[%c0_7, %c0_8] : memref<16x16xf32, #tpu.memory_space<vmem>>, vector<16x16xf32>
    %cst_9 = arith.constant dense<0.000000e+00> : vector<16x64xf32>
    %6 = tpu.matmul %5, %1, %cst_9 {dimension_numbers = #tpu.dot_dimension_numbers<[1], [0], [0], [1], [0, 0, 1, 1], [], []>} : vector<16x16xf32>, vector<16x64xf32>, vector<16x64xf32> -> vector<16x64xf32>
    %7 = arith.addf %4, %6 : vector<16x64xf32>
    %8 = vector.broadcast %2 : vector<1x64xf32> to vector<16x64xf32>
    %9 = arith.addf %7, %8 : vector<16x64xf32>
    %cst_10 = arith.constant 0.000000e+00 : f32
    %10 = vector.broadcast %cst_10 : f32 to vector<16x64xf32>
    %11 = arith.maximumf %9, %10 : vector<16x64xf32>
    %c0_11 = arith.constant 0 : index
    %c0_12 = arith.constant 0 : index
    %12 = vector.load %arg6[%c0_11, %c0_12] : memref<64x64xf32, #tpu.memory_space<vmem>>, vector<64x64xf32>
    %c0_13 = arith.constant 0 : index
    %c0_14 = arith.constant 0 : index
    %13 = vector.load %arg7[%c0_13, %c0_14] : memref<1x64xf32, #tpu.memory_space<vmem>>, vector<1x64xf32>
    %cst_15 = arith.constant dense<0.000000e+00> : vector<16x64xf32>
    %14 = tpu.matmul %11, %12, %cst_15 {dimension_numbers = #tpu.dot_dimension_numbers<[1], [0], [0], [1], [0, 0, 1, 1], [], []>} : vector<16x64xf32>, vector<64x64xf32>, vector<16x64xf32> -> vector<16x64xf32>
    %15 = vector.broadcast %13 : vector<1x64xf32> to vector<16x64xf32>
    %16 = arith.addf %14, %15 : vector<16x64xf32>
    %cst_16 = arith.constant 0.000000e+00 : f32
    %17 = vector.broadcast %cst_16 : f32 to vector<16x64xf32>
    %18 = arith.maximumf %16, %17 : vector<16x64xf32>
    %c0_17 = arith.constant 0 : index
    %c0_18 = arith.constant 0 : index
    %19 = vector.load %arg8[%c0_17, %c0_18] : memref<64x128xf32, #tpu.memory_space<vmem>>, vector<64x128xf32>
    %c0_19 = arith.constant 0 : index
    %c0_20 = arith.constant 0 : index
    %20 = vector.load %arg9[%c0_19, %c0_20] : memref<1x128xf32, #tpu.memory_space<vmem>>, vector<1x128xf32>
    %cst_21 = arith.constant dense<0.000000e+00> : vector<16x128xf32>
    %21 = tpu.matmul %18, %19, %cst_21 {dimension_numbers = #tpu.dot_dimension_numbers<[1], [0], [0], [1], [0, 0, 1, 1], [], []>} : vector<16x64xf32>, vector<64x128xf32>, vector<16x128xf32> -> vector<16x128xf32>
    %22 = vector.broadcast %20 : vector<1x128xf32> to vector<16x128xf32>
    %23 = arith.addf %21, %22 : vector<16x128xf32>
    %c0_22 = arith.constant 0 : index
    %c0_23 = arith.constant 0 : index
    %24 = vector.load %arg10[%c0_22, %c0_23] : memref<16x128xf32, #tpu.memory_space<vmem>>, vector<16x128xf32>
    tpu.vector_store %arg10[%c0_22, %c0_23], %23 {strides = array<i32>} : memref<16x128xf32, #tpu.memory_space<vmem>>, vector<16x128xf32>,
    return
  }
  func.func @transform_0(%arg0: i32) -> (i32, i32) {
    %c0_i32 = arith.constant 0 : i32
    %c0_i32_0 = arith.constant 0 : i32
    return %arg0, %c0_i32 : i32, i32
  }
  func.func @transform_1(%arg0: i32) -> (i32, i32) {
    %c0_i32 = arith.constant 0 : i32
    %c0_i32_0 = arith.constant 0 : i32
    return %arg0, %c0_i32 : i32, i32
  }
  func.func @transform_2(%arg0: i32) -> (i32, i32) {
    %c0_i32 = arith.constant 0 : i32
    %c0_i32_0 = arith.constant 0 : i32
    %c0_i32_1 = arith.constant 0 : i32
    return %c0_i32, %c0_i32_0 : i32, i32
  }
  func.func @transform_3(%arg0: i32) -> (i32, i32) {
    %c0_i32 = arith.constant 0 : i32
    %c0_i32_0 = arith.constant 0 : i32
    %c0_i32_1 = arith.constant 0 : i32
    return %c0_i32, %c0_i32_0 : i32, i32
  }
  func.func @transform_4(%arg0: i32) -> (i32, i32) {
    %c0_i32 = arith.constant 0 : i32
    %c0_i32_0 = arith.constant 0 : i32
    %c0_i32_1 = arith.constant 0 : i32
    return %c0_i32, %c0_i32_0 : i32, i32
  }
  func.func @transform_5(%arg0: i32) -> (i32, i32) {
    %c0_i32 = arith.constant 0 : i32
    %c0_i32_0 = arith.constant 0 : i32
    %c0_i32_1 = arith.constant 0 : i32
    return %c0_i32, %c0_i32_0 : i32, i32
  }
  func.func @transform_6(%arg0: i32) -> (i32, i32) {
    %c0_i32 = arith.constant 0 : i32
    %c0_i32_0 = arith.constant 0 : i32
    %c0_i32_1 = arith.constant 0 : i32
    return %c0_i32, %c0_i32_0 : i32, i32
  }
  func.func @transform_7(%arg0: i32) -> (i32, i32) {
    %c0_i32 = arith.constant 0 : i32
    %c0_i32_0 = arith.constant 0 : i32
    %c0_i32_1 = arith.constant 0 : i32
    return %c0_i32, %c0_i32_0 : i32, i32
  }
  func.func @transform_8(%arg0: i32) -> (i32, i32) {
    %c0_i32 = arith.constant 0 : i32
    %c0_i32_0 = arith.constant 0 : i32
    %c0_i32_1 = arith.constant 0 : i32
    return %c0_i32, %c0_i32_0 : i32, i32
  }
  func.func @transform_9(%arg0: i32) -> (i32, i32) {
    %c0_i32 = arith.constant 0 : i32
    %c0_i32_0 = arith.constant 0 : i32
    return %arg0, %c0_i32 : i32, i32
  }
}

</mosaic_0001>

<bundles_post_ra>
// kernel: tpu_custom_call.1
= control target key start
LH: loop header
LB: loop body
LE: loop exit
PB: predicated region body
PF: predicated region fallthrough
CT: control target
= control target key end

     0   :  { %14 = vsyncpa [#allocation3], 0  ;;  %s643_s0 = inlined_call_operand.hbm [shape: f32[16,16], index: 0, kind: input, shape index: {}]   ;;  %s644_s1 = inlined_call_operand.hbm [shape: f32[16,16], index: 1, kind: input, shape index: {}]   ;;  %s645_s2 = inlined_call_operand.hbm [shape: f32[16,64], index: 2, kind: input, shape index: {}]   ;;  %s646_s3 = inlined_call_operand.hbm [shape: f32[16,64], index: 3, kind: input, shape index: {}]   ;;  %s647_s4 = inlined_call_operand.vmem [shape: f32[1,64], index: 4, kind: input, shape index: {}]   ;;  %s648_s5 = inlined_call_operand.hbm [shape: f32[64,64], index: 5, kind: input, shape index: {}]   ;;  %s649_s6 = inlined_call_operand.vmem [shape: f32[1,64], index: 6, kind: input, shape index: {}]   ;;  %s650_s7 = inlined_call_operand.hbm [shape: f32[64,128], index: 7, kind: input, shape index: {}]   ;;  %s651_s8 = inlined_call_operand.vmem [shape: f32[1,128], index: 8, kind: input, shape index: {}]   ;;  %s652_s9 = inlined_call_operand.hbm [shape: f32[16,128], index: 9, kind: output, shape index: {}]  }
   0x1   :  { %15 = vsyncpa [#allocation6], 0 }
   0x2   :  { %16 = vsyncpa [#allocation9], 0 }
   0x3   :  { %17 = vsyncpa [#allocation12], 0 }
   0x4   :  { %18 = vsyncpa [#allocation4], 0  ;;  %s36_s11 = sshll.u32 %s644_s1, 4  ;;  %s525_s12 = smov [#allocation5]   ;;  %s37_s11 = int_to_ptr.hbm [resolvable:$true] %s36_s11 }
   0x5   :  { %s38_s13 = sshll.u32 %s525_s12, 4  ;;  %s62_s16 = sshll.u32 %s646_s3, 4  ;;  %s39_s13 = int_to_ptr.vmem [resolvable:$true] %s38_s13  ;;  %s63_s16 = int_to_ptr.hbm [resolvable:$true] %s62_s16 }
   0x6   :  { %s526_s17 = smov 128   ;;  %s527_s18 = smov 8  }
   0x7   :  { %44 = dma.hbm_to_vmem [thread:$0]  %s37_s11, 256, %s39_s13, [#allocation6], %s526_s17, %s526_s17, %s527_s18  }
   0x8   :  { %s528_s19 = smov [#allocation8]   ;;  %s23_s1 = sshll.u32 %s643_s0, 4  ;;  %s24_s1 = int_to_ptr.hbm [resolvable:$true] %s23_s1 }
   0x9   :  { %s64_s20 = sshll.u32 %s528_s19, 4  ;;  %s49_s24 = sshll.u32 %s645_s2, 4  ;;  %s65_s20 = int_to_ptr.vmem [resolvable:$true] %s64_s20  ;;  %s50_s24 = int_to_ptr.hbm [resolvable:$true] %s49_s24 }
   0xa   :  { %70 = dma.hbm_to_vmem [thread:$0]  %s63_s16, 256, %s65_s20, [#allocation9], %s526_s17, %s526_s17, %s527_s18  }
   0xb   :  { %s529_s25 = smov [#allocation2]   ;;  %s530_s27 = smov [#allocation7]  }
   0xc   :  { %s25_s26 = sshll.u32 %s529_s25, 4  ;;  %s51_s0 = sshll.u32 %s530_s27, 4  ;;  %s26_s26 = int_to_ptr.vmem [resolvable:$true] %s25_s26  ;;  %s52_s0 = int_to_ptr.vmem [resolvable:$true] %s51_s0 }
   0xd   :  { %31 = dma.hbm_to_vmem [thread:$0]  %s24_s1, 256, %s26_s26, [#allocation3], %s526_s17, %s526_s17, %s527_s18  }
   0xe   :  { %s77_s30 = sshll.u32 %s648_s5, 4  ;;  %s92_s11 = sshll.u32 %s650_s7, 4  ;;  %s78_s30 = int_to_ptr.hbm [resolvable:$true] %s77_s30  ;;  %s93_s11 = int_to_ptr.hbm [resolvable:$true] %s92_s11 }
   0xf   :  { %57 = dma.hbm_to_vmem [thread:$0]  %s50_s24, 256, %s52_s0, [#allocation6], %s526_s17, %s526_s17, %s527_s18  }
  0x10   :  { %s531_s12 = smov [#allocation10]   ;;  %s532_s14 = smov [#allocation11]  }
  0x11   :  { %s79_s13 = sshll.u32 %s531_s12, 4  ;;  %s94_s5 = sshll.u32 %s532_s14, 4  ;;  %s80_s13 = int_to_ptr.vmem [resolvable:$true] %s79_s13  ;;  %s95_s5 = int_to_ptr.vmem [resolvable:$true] %s94_s5 }
  0x12   :  { %85 = dma.hbm_to_vmem [thread:$0]  %s78_s30, 1024, %s80_s13, [#allocation9], %s526_s17, %s526_s17, %s527_s18  }
  0x13   :  { %100 = dma.hbm_to_vmem [thread:$0]  %s93_s11, 1024, %s95_s5, [#allocation12], %s526_s17, %s526_s17, %s527_s18  }
  0x14   :  { %515 = dma.done.wait [#allocation3], 256  }
  0x15   :  { %516 = vsyncadd [#allocation3], 4294967040 }
  0x16   :  { %517 = dma.done.wait [#allocation6], 512  }
  0x17   :  { %518 = vsyncadd [#allocation6], 4294966784 }
  0x18   :  { %519 = dma.done.wait [#allocation9], 1280  }
  0x19   :  { %520 = vsyncadd [#allocation9], 4294966016 }
  0x1a   :  { %521 = dma.done.wait [#allocation12], 1024  }
  0x1b   :  { %522 = vsyncadd [#allocation12], 4294966272  ;;  %v130_v0 = vld [vmem:[#allocation8 + $0x8] sm:$0xff]  ;;  %v128_v1 = vld [vmem:[#allocation7 + $0x8] sm:$0xff]  ;;  %vm136_vm0 = vcmask 130048   ;;  %vm214_vm1 = vcmask 523264  }
  0x1c   :  { %v129_v2 = vld [vmem:[#allocation8] sm:$0xff]  ;;  %157 = vmatpush.msra.mxu0 %v130_v0  ;;  %186 = vmatpush.msra.mxu1 %v128_v1  ;;  %v127_v3 = vld [vmem:[#allocation7] sm:$0xff]  ;;  %v209_v6 = vld [vmem:[#allocation10 + $0x38] sm:$0xff]  ;;  %s533_s21 = smov [#allocation13]   ;;  %s295_s3 = sshll.u32 %s652_s9, 4  ;;  %s296_s3 = int_to_ptr.hbm [resolvable:$true] %s295_s3 }
  0x1d   :  { %v134_v4 = vld [vmem:[#allocation5] sm:$0xff]  ;;  %v132_v5 = vld [vmem:[#allocation2] sm:$0xff]  ;;  %319 = vmatpush.msra.mxu2 %v209_v6  ;;  %v207_v8 = vld [vmem:[#allocation10 + $0x28] sm:$0xff]  ;;  %s293_s22 = sshll.u32 %s533_s21, 4  ;;  %s294_s22 = int_to_ptr.vmem [resolvable:$true] %s293_s22 }
  0x1e   :  { %158 = vmatpush.msra.mxu0 %v129_v2  ;;  %187 = vmatpush.msra.mxu1 %v127_v3  ;;  %v208_v7 = vld [vmem:[#allocation10 + $0x30] sm:$0xff]  ;;  %v206_v9 = vld [vmem:[#allocation10 + $0x20] sm:$0xff]  ;;  %v135_v10 = vld [vmem:[#allocation5 + $0x8] sm:$0xff] }
  0x1f   :  { %311 = vmatmul.msk.f32.vlgmr.msra.gmra.mxu0 %vm136_vm0, %v134_v4  ;;  %313 = vmatmul.msk.f32.vlgmr.msra.gmra.mxu1 %vm136_vm0, %v132_v5  ;;  %v133_v11 = vld [vmem:[#allocation2 + $0x8] sm:$0xff]  ;;  %v205_v12 = vld [vmem:[#allocation10 + $0x18] sm:$0xff]  ;;  %v204_v13 = vld [vmem:[#allocation10 + $0x10] sm:$0xff] }
  0x20   :  { %229 = vmatpush.msrb.mxu0 %v209_v6  ;;  %320 = vmatpush.msra.mxu2 %v208_v7  ;;  %v203_v14 = vld [vmem:[#allocation10 + $0x8] sm:$0xff]  ;;  %v202_v15 = vld [vmem:[#allocation10] sm:$0xff]  ;;  %v253_v16 = vld [vmem:[#allocation11 + $0x38] sm:$0xff] }
  0x21   :  { %v252_v17 = vld [vmem:[#allocation11 + $0x30] sm:$0xff]  ;;  %272 = vmatpush.msrb.mxu1 %v253_v16  ;;  %327 = vmatpush.msra.mxu3 %v253_v16  ;;  %v251_v18 = vld [vmem:[#allocation11 + $0x28] sm:$0xff]  ;;  %v250_v19 = vld [vmem:[#allocation11 + $0x20] sm:$0xff] }
  0x22   :  { %230 = vmatpush.msrb.mxu0 %v208_v7  ;;  %321 = vmatpush.msra.mxu2 %v207_v8  ;;  %v249_v20 = vld [vmem:[#allocation11 + $0x18] sm:$0xff]  ;;  %v344_v21 = vld [vmem:[%s647_s4] ss:$0 sm:$0xff]  ;;  %v248_v32 = vld [vmem:[#allocation11 + $0x10] sm:$0xff] }
  0x23   :  { %273 = vmatpush.msrb.mxu1 %v252_v17  ;;  %328 = vmatpush.msra.mxu3 %v252_v17  ;;  %v247_v33 = vld [vmem:[#allocation11 + $0x8] sm:$0xff]  ;;  %v246_v34 = vld [vmem:[#allocation11] sm:$0xff] }
  0x24   :  { %231 = vmatpush.msrb.mxu0 %v207_v8  ;;  %322 = vmatpush.msra.mxu2 %v206_v9  ;;  %v345_v35 = vld [vmem:[%s649_s6] ss:$0 sm:$0xff] }
  0x25   :  { %274 = vmatpush.msrb.mxu1 %v251_v18  ;;  %329 = vmatpush.msra.mxu3 %v251_v18  ;;  %v346_v42 = vld [vmem:[%s651_s8] ss:$0 sm:$0xff] }
  0x26   :  { %232 = vmatpush.msrb.mxu0 %v206_v9  ;;  %323 = vmatpush.msra.mxu2 %v205_v12 }
  0x27   :  { %312 = vmatmul.msk.f32.gmra.mxu0 %vm136_vm0, %v135_v10  ;;  %314 = vmatmul.msk.f32.gmra.mxu1 %vm136_vm0, %v133_v11 }
  0x28   :  { %233 = vmatpush.msrb.mxu0 %v205_v12  ;;  %324 = vmatpush.msra.mxu2 %v204_v13 }
  0x29   :  { %275 = vmatpush.msrb.mxu1 %v250_v19  ;;  %330 = vmatpush.msra.mxu3 %v250_v19 }
  0x2a   :  { %234 = vmatpush.msrb.mxu0 %v204_v13  ;;  %325 = vmatpush.msra.mxu2 %v203_v14 }
  0x2b   :  { %276 = vmatpush.msrb.mxu1 %v249_v20  ;;  %331 = vmatpush.msra.mxu3 %v249_v20 }
  0x2c   :  { %235 = vmatpush.msrb.mxu0 %v203_v14  ;;  %326 = vmatpush.msra.mxu2 %v202_v15 }
  0x2d   :  { %277 = vmatpush.msrb.mxu1 %v248_v32  ;;  %332 = vmatpush.msra.mxu3 %v248_v32 }
  0x2e   :  { %236 = vmatpush.msrb.mxu0 %v202_v15 }
  0x2f   :  { %278 = vmatpush.msrb.mxu1 %v247_v33  ;;  %333 = vmatpush.msra.mxu3 %v247_v33 }
  0x31   :  { %279 = vmatpush.msrb.mxu1 %v246_v34  ;;  %334 = vmatpush.msra.mxu3 %v246_v34 }
  0x9c   :  { %v160_v22 = vpop.f32.mrf.mxu0  ;;  %v189_v23 = vpop.f32.mrf.mxu1 }
  0x9d   :  { %v190_v24 = vadd.f32 %v189_v23, %v160_v22 }
  0x9f   :  { %v198_v25 = vadd.f32 %v344_v21, %v190_v24 }
  0xa1   :  { %v200_v26 = vmax.f32 %v198_v25, 0.0 }
  0xa3   :  { %315 = vmatmul.msk.f32.vlgmr.msrb.gmra.mxu0 %vm214_vm1, %v200_v26 }
  0xa4   :  { %v163_v27 = vpop.f32.mrf.mxu0  ;;  %v192_v28 = vpop.f32.mrf.mxu1 }
  0xa5   :  { %v193_v29 = vadd.f32 %v192_v28, %v163_v27 }
  0xa7   :  { %v199_v30 = vadd.f32 %v344_v21, %v193_v29 }
  0xa9   :  { %v201_v31 = vmax.f32 %v199_v30, 0.0 }
  0xab   :  { %316 = vmatmul.msk.f32.vlgmr.msra.gmra.mxu2 %vm214_vm1, %v201_v31 }
 0x120   :  { %v238_v36 = vpop.f32.mrf.mxu0 }
 0x121   :  { %v239_v37 = vadd.f32 %v345_v35, %v238_v36 }
 0x123   :  { %v244_v38 = vmax.f32 %v239_v37, 0.0 }
 0x125   :  { %317 = vmatmul.msk.f32.vlgmr.msrb.gmra.mxu1 %vm214_vm1, %v244_v38 }
 0x12e   :  { %v241_v39 = vpop.f32.mrf.mxu2 }
 0x12f   :  { %v242_v40 = vadd.f32 %v345_v35, %v241_v39 }
 0x131   :  { %v245_v41 = vmax.f32 %v242_v40, 0.0 }
 0x133   :  { %318 = vmatmul.msk.f32.vlgmr.msra.gmra.mxu3 %vm214_vm1, %v245_v41 }
 0x1a2   :  { %v281_v43 = vpop.f32.mrf.mxu1 }
 0x1a3   :  { %v282_v44 = vadd.f32 %v346_v42, %v281_v43 }
 0x1a5   :  { %287 = vst [vmem:[#allocation13] sm:$0xff] %v282_v44 }
 0x1b6   :  { %v284_v45 = vpop.f32.mrf.mxu3 }
 0x1b7   :  { %v285_v46 = vadd.f32 %v346_v42, %v284_v45 }
 0x1b9   :  { %288 = vst [vmem:[#allocation13 + $0x8] sm:$0xff] %v285_v46 }
 0x1ba   :  { %301 = dma.vmem_to_hbm [thread:$0]  %s294_s22, 256, %s296_s3, [#allocation4], %s526_s17, %s526_s17, %s527_s18  }
 0x1bb   :  { %523 = dma.done.wait [#allocation4], 256  }
 0x1bc   :  { %524 = vsyncadd [#allocation4], 4294967040 }
 0x1bd   :  { %306 = vsyncpa [#allocation3], 1 }
 0x1be   :  { %307 = vsyncpa [#allocation6], 1 }
 0x1bf   :  { %308 = vsyncpa [#allocation9], 1 }
 0x1c0   :  { %309 = vsyncpa [#allocation12], 1 }
 0x1c1   :  { %310 = vsyncpa [#allocation4], 1 }

</bundles_post_ra>
